<compile_context>
chip_gen: v5e
topology: v5e:2x2
jax: 0.10.0
libtpu: 0.0.40
codegen_flags: <defaults>
</compile_context>

<pallas_src>
import jax
import jax.numpy as jnp
from jax import lax
from jax.experimental import pallas as pl
from jax.experimental.pallas import tpu as pltpu

EPS = 1e-5  # PyTorch BatchNorm2d default


# ---------------------------------------------------------------------------
# fused Up kernel: upsample+pad+concat prologue + both conv/BN/ReLU stages
# ---------------------------------------------------------------------------
def _up_double_conv_kernel(x1_ref, x2_ref, mh1_ref, mw1_ref, pw2_ref, prow_ref,
                           w1_ref, s1_ref, b1_ref, w2_ref, s2_ref, b2_ref,
                           o_ref):
    """One image per grid step; W and C folded onto the 128-lane axis.

    x1_ref : (1, H1, W1*C1)          lane-folded low-res input
    x2_ref : (1, H,  W*C2)           lane-folded skip input
    mh1    : (Hp, H1)                H-bilinear-interp + row placement of x1
    mw1    : (W1*C1, Wp*Cin)         W-bilinear-interp + lane/channel placement
    pw2    : (W*C2,  Wp*Cin)         lane/channel placement of x2
    prow   : (Hp, H)                 row placement [0; I; 0] (H zero-padding)
    w1     : (3, Wp*Cin,  Wp*Cmid)   block-Toeplitz conv1 weights per dy (bf16)
    s1/b1  : (1, Wp*Cmid)            folded BN1 scale/bias (0 on W-pad lanes)
    w2     : (3, Wp*Cmid, W*Cout)    block-Toeplitz conv2 weights per dy (bf16)
    s2/b2  : (1, W*Cout)             folded BN2 scale/bias
    o_ref  : (1, H, W*Cout)          lane-dense output block
    """
    H = o_ref.shape[1]
    bf16 = jnp.bfloat16

    # ---- fused bilinear-2x upsample + pad + channel concat (prologue) ----
    x1w = jnp.dot(x1_ref[0], mw1_ref[...], preferred_element_type=jnp.float32)
    x1p = jnp.dot(mh1_ref[...], x1w, preferred_element_type=jnp.float32)      # (Hp, Wp*Cin)
    x2w = jnp.dot(x2_ref[0], pw2_ref[...], preferred_element_type=jnp.float32)
    xp = x1p + jnp.dot(prow_ref[...], x2w, preferred_element_type=jnp.float32)

    # ---- stage 1: conv3x3 as 3 row-shifted bf16 MXU matmuls + BN + ReLU ----
    acc1 = jnp.dot(xp[0:H].astype(bf16), w1_ref[0],
                   preferred_element_type=jnp.float32)
    acc1 += jnp.dot(xp[1:H + 1].astype(bf16), w1_ref[1],
                    preferred_element_type=jnp.float32)
    acc1 += jnp.dot(xp[2:H + 2].astype(bf16), w1_ref[2],
                    preferred_element_type=jnp.float32)
    y1 = jnp.maximum(acc1 * s1_ref[...] + b1_ref[...], 0.0)   # (H, Wp*Cmid)

    # Zero-padded intermediate via placement matmul; stays in registers.
    # W-pad lanes are already zero (zero Toeplitz columns + zero BN affine).
    mid = jnp.dot(prow_ref[...], y1, preferred_element_type=jnp.float32)      # (Hp, Wp*Cmid)

    # ---- stage 2: conv3x3 + BN + ReLU ----
    acc2 = jnp.dot(mid[0:H].astype(bf16), w2_ref[0],
                   preferred_element_type=jnp.float32)
    acc2 += jnp.dot(y1.astype(bf16), w2_ref[1],              # mid[1:H+1] == y1
                    preferred_element_type=jnp.float32)
    acc2 += jnp.dot(mid[2:H + 2].astype(bf16), w2_ref[2],
                    preferred_element_type=jnp.float32)
    o_ref[0] = jnp.maximum(acc2 * s2_ref[...] + b2_ref[...],
                           0.0).astype(o_ref.dtype)


# ---------------------------------------------------------------------------
# one-time (cacheable) parameter preparation
# ---------------------------------------------------------------------------
def _bilinear_matrix(n_in, n_out):
    """(n_out, n_in) matrix == PyTorch Upsample(bilinear, align_corners=True)."""
    if n_in == 1:
        return jnp.ones((n_out, 1), jnp.float32)
    src = jnp.arange(n_out, dtype=jnp.float32) * (n_in - 1) / (n_out - 1)
    lo = jnp.clip(jnp.floor(src).astype(jnp.int32), 0, n_in - 2)
    frac = src - lo.astype(jnp.float32)
    rows = jnp.arange(n_out)
    m = jnp.zeros((n_out, n_in), jnp.float32)
    m = m.at[rows, lo].add(1.0 - frac)
    m = m.at[rows, lo + 1].add(frac)
    return m


def _toeplitz_conv_weights(w_hwio, W, pad_output):
    """Expand 3x3 HWIO conv weights into 3 block-Toeplitz matrices (per dy)."""
    KH, KW, Ci, Co = w_hwio.shape
    Wp = W + 2
    Wo = Wp if pad_output else W
    shift = 1 if pad_output else 0
    idx = jnp.arange(W)
    mats = []
    for dy in range(KH):
        m = jnp.zeros((Wp, Ci, Wo, Co), w_hwio.dtype)
        for dx in range(KW):
            m = m.at[idx + dx, :, idx + shift, :].set(
                jnp.broadcast_to(w_hwio[dy, dx][None], (W, Ci, Co)))
        mats.append(m.reshape(Wp * Ci, Wo * Co))
    return jnp.stack(mats, axis=0)


def _fold_bn(conv_bias, gamma, beta, running_mean, running_var):
    scale = gamma / jnp.sqrt(running_var + EPS)
    bias = (conv_bias - running_mean) * scale + beta
    return scale, bias


def _lane_fold(v, W, pad_output):
    t = jnp.tile(v, W)
    if pad_output:
        z = jnp.zeros((v.shape[0],), v.dtype)
        t = jnp.concatenate([z, t, z])
    return t.reshape(1, -1)


def prepare_up_params(params, x1_shape, x2_shape):
    """Precompute all kernel constants once (depend only on params/shapes)."""
    _, C1, H1, W1 = x1_shape
    _, C2, H2, W2 = x2_shape
    Cin = C1 + C2
    Hp, Wp = H2 + 2, W2 + 2
    H1u, W1u = 2 * H1, 2 * W1
    dY, dX = H2 - H1u, W2 - W1u
    assert dY >= 0 and dX >= 0  # TODO(synk): cropping (negative pad) unsupported
    padT, padL = dY // 2, dX // 2
    f32 = jnp.float32

    mh = _bilinear_matrix(H1, H1u)          # (H1u, H1)
    mw = _bilinear_matrix(W1, W1u)          # (W1u, W1)

    # x1: H-interp + row placement into padded rows [1+padT, 1+padT+H1u)
    mh1 = jnp.zeros((Hp, H1), f32).at[1 + padT:1 + padT + H1u, :].set(mh)
    # x1: W-interp + lane/channel placement (x1 channels sit after x2's)
    mwT = jnp.zeros((W1, Wp), f32).at[:, 1 + padL:1 + padL + W1u].set(mw.T)
    ch1 = jnp.zeros((C1, Cin), f32).at[:, C2:C2 + C1].set(jnp.eye(C1, dtype=f32))
    mw1 = (mwT[:, None, :, None] * ch1[None, :, None, :]).reshape(W1 * C1, Wp * Cin)
    # x2: lane/channel placement only
    colP = jnp.zeros((W2, Wp), f32).at[:, 1:1 + W2].set(jnp.eye(W2, dtype=f32))
    ch2 = jnp.zeros((C2, Cin), f32).at[:, 0:C2].set(jnp.eye(C2, dtype=f32))
    pw2 = (colP[:, None, :, None] * ch2[None, :, None, :]).reshape(W2 * C2, Wp * Cin)
    # shared row-placement (H zero-padding) matrix
    prow = jnp.zeros((Hp, H2), f32).at[1:1 + H2, :].set(jnp.eye(H2, dtype=f32))

    # block-Toeplitz conv weights (bf16 MXU operands) + folded inference BN
    w1t = _toeplitz_conv_weights(
        jnp.transpose(params["w1"], (2, 3, 1, 0)), W2, pad_output=True
    ).astype(jnp.bfloat16)
    w2t = _toeplitz_conv_weights(
        jnp.transpose(params["w2"], (2, 3, 1, 0)), W2, pad_output=False
    ).astype(jnp.bfloat16)
    s1, b1 = _fold_bn(params["b1"], params["g1"], params["be1"],
                      params["rm1"], params["rv1"])
    s2, b2 = _fold_bn(params["b2"], params["g2"], params["be2"],
                      params["rm2"], params["rv2"])

    return dict(
        mh1=mh1, mw1=mw1, pw2=pw2, prow=prow,
        w1t=w1t, s1f=_lane_fold(s1, W2, True), b1f=_lane_fold(b1, W2, True),
        w2t=w2t, s2f=_lane_fold(s2, W2, False), b2f=_lane_fold(b2, W2, False),
    )


# ---------------------------------------------------------------------------
# forward (jit once; per-call path is just layout + one pallas_call)
# ---------------------------------------------------------------------------
def up_forward(x1, x2, prep):
    N, C1, H1, W1 = x1.shape
    _, C2, H2, W2 = x2.shape
    Cin = C1 + C2
    Cout = prep["s2f"].shape[1] // W2
    Cmid = prep["s1f"].shape[1] // (W2 + 2)

    # NCHW -> lane-folded (N, H, W*C); these tiny transposes are the only
    # wrapper-side data movement left.
    x1f = jnp.transpose(x1, (0, 2, 3, 1)).reshape(N, H1, W1 * C1).astype(jnp.float32)
    x2f = jnp.transpose(x2, (0, 2, 3, 1)).reshape(N, H2, W2 * C2).astype(jnp.float32)

    conv_flops = 2 * N * H2 * W2 * 9 * (Cin * Cmid + Cmid * Cout)  # true conv FLOPs
    all_in = (x1f, x2f, prep["mh1"], prep["mw1"], prep["pw2"], prep["prow"],
              prep["w1t"], prep["s1f"], prep["b1f"],
              prep["w2t"], prep["s2f"], prep["b2f"])
    bytes_accessed = int(sum(a.size * a.dtype.itemsize for a in all_in)
                         + N * H2 * W2 * Cout * 4)

    out = pl.pallas_call(
        _up_double_conv_kernel,
        out_shape=jax.ShapeDtypeStruct((N, H2, W2 * Cout), jnp.float32),
        grid=(N,),
        in_specs=[
            pl.BlockSpec((1, H1, W1 * C1), lambda n: (n, 0, 0)),
            pl.BlockSpec((1, H2, W2 * C2), lambda n: (n, 0, 0)),
            pl.BlockSpec(prep["mh1"].shape, lambda n: (0, 0)),
            pl.BlockSpec(prep["mw1"].shape, lambda n: (0, 0)),
            pl.BlockSpec(prep["pw2"].shape, lambda n: (0, 0)),
            pl.BlockSpec(prep["prow"].shape, lambda n: (0, 0)),
            pl.BlockSpec(prep["w1t"].shape, lambda n: (0, 0, 0)),
            pl.BlockSpec(prep["s1f"].shape, lambda n: (0, 0)),
            pl.BlockSpec(prep["b1f"].shape, lambda n: (0, 0)),
            pl.BlockSpec(prep["w2t"].shape, lambda n: (0, 0, 0)),
            pl.BlockSpec(prep["s2f"].shape, lambda n: (0, 0)),
            pl.BlockSpec(prep["b2f"].shape, lambda n: (0, 0)),
        ],
        out_specs=pl.BlockSpec((1, H2, W2 * Cout), lambda n: (n, 0, 0)),
        compiler_params=pltpu.CompilerParams(
            dimension_semantics=("parallel",),      # >=2 steps keeps both v7x TCs busy
            vmem_limit_bytes=32 * 1024 * 1024),
        cost_estimate=pl.CostEstimate(flops=conv_flops, transcendentals=0,
                                      bytes_accessed=bytes_accessed),
    )(*all_in)

    out = out.reshape(N, H2, W2, Cout)
    return jnp.transpose(out, (0, 3, 1, 2))         # NHWC -> NCHW


# ---------------- pure-JAX reference (for correctness check) ----------------
def _upsample_pad_concat_ref(x1, x2):
    _, _, H1, W1 = x1.shape
    _, _, H2, W2 = x2.shape
    mh = _bilinear_matrix(H1, 2 * H1)
    mw = _bilinear_matrix(W1, 2 * W1)
    x1u = jnp.einsum("oh,nchw,pw->ncop", mh, x1.astype(jnp.float32), mw)
    dY, dX = H2 - 2 * H1, W2 - 2 * W1
    x1u = jnp.pad(x1u, ((0, 0), (0, 0),
                        (dY // 2, dY - dY // 2), (dX // 2, dX - dX // 2)))
    return jnp.concatenate([x2.astype(jnp.float32), x1u], axis=1)


def _ref_conv_bn_relu(x, w, b, gamma, beta, rmean, rvar):
    y = lax.conv_general_dilated(
        x, w, window_strides=(1, 1), padding=((1, 1), (1, 1)),
        dimension_numbers=("NCHW", "OIHW", "NCHW"))
    y = y + b[None, :, None, None]
    y = (y - rmean[None, :, None, None]) / jnp.sqrt(rvar[None, :, None, None] + EPS)
    y = y * gamma[None, :, None, None] + beta[None, :, None, None]
    return jnp.maximum(y, 0.0)


def up_forward_ref(x1, x2, p):
    x = _upsample_pad_concat_ref(x1, x2)
    x = _ref_conv_bn_relu(x, p["w1"], p["b1"], p["g1"], p["be1"], p["rm1"], p["rv1"])
    x = _ref_conv_bn_relu(x, p["w2"], p["b2"], p["g2"], p["be2"], p["rm2"], p["rv2"])
    return x


if __name__ == "__main__":
    # Up(in_channels=8, out_channels=8): mid = in_channels // 2 = 4.
    # x1 and x2 each carry in_channels // 2 = 4 channels (standard U-Net wiring).
    N = 2
    in_ch, out_ch = 8, 8
    mid_ch = in_ch // 2
    H1 = W1 = 8           # x1 spatial (bilinear-upsampled 2x -> 16)
    H2 = W2 = 16          # x2 spatial

    key = jax.random.PRNGKey(0)
    ks = jax.random.split(key, 14)
    params = dict(
        w1=0.1 * jax.random.normal(ks[0], (mid_ch, in_ch, 3, 3), jnp.float32),
        b1=0.05 * jax.random.normal(ks[1], (mid_ch,), jnp.float32),
        g1=1.0 + 0.1 * jax.random.normal(ks[2], (mid_ch,), jnp.float32),
        be1=0.05 * jax.random.normal(ks[3], (mid_ch,), jnp.float32),
        rm1=0.05 * jax.random.normal(ks[4], (mid_ch,), jnp.float32),
        rv1=1.0 + 0.1 * jax.random.uniform(ks[5], (mid_ch,), jnp.float32),
        w2=0.1 * jax.random.normal(ks[6], (out_ch, mid_ch, 3, 3), jnp.float32),
        b2=0.05 * jax.random.normal(ks[7], (out_ch,), jnp.float32),
        g2=1.0 + 0.1 * jax.random.normal(ks[8], (out_ch,), jnp.float32),
        be2=0.05 * jax.random.normal(ks[9], (out_ch,), jnp.float32),
        rm2=0.05 * jax.random.normal(ks[10], (out_ch,), jnp.float32),
        rv2=1.0 + 0.1 * jax.random.uniform(ks[11], (out_ch,), jnp.float32),
    )

    x1 = jax.random.normal(ks[12], (N, in_ch // 2, H1, W1), jnp.float32)
    x2 = jax.random.normal(ks[13], (N, in_ch - in_ch // 2, H2, W2), jnp.float32)

    # One-time prep (cache this; it depends only on params + static shapes).
    prep = prepare_up_params(params, x1.shape, x2.shape)
    up_fwd = jax.jit(up_forward)

    out = jax.block_until_ready(up_fwd(x1, x2, prep))
    ref = jax.block_until_ready(up_forward_ref(x1, x2, params))

    assert out.shape == (N, out_ch, H2, W2), out.shape
    max_err = float(jnp.abs(out - ref).max())
    # bf16 MXU operands with f32 accumulation -> loosen tolerance vs f32 ref.
    assert jnp.allclose(out, ref, rtol=3e-2, atol=3e-2), max_err

    print("KERNEL_OK")
</pallas_src>

<mosaic_0001>
module attributes {stable_mosaic.version = 11 : i64} {
  func.func @_up_double_conv_kernel(%arg0: i32, %arg1: memref<1x8x32xf32, #tpu.memory_space<vmem>>, %arg2: memref<1x16x64xf32, #tpu.memory_space<vmem>>, %arg3: memref<18x8xf32, #tpu.memory_space<vmem>>, %arg4: memref<32x144xf32, #tpu.memory_space<vmem>>, %arg5: memref<64x144xf32, #tpu.memory_space<vmem>>, %arg6: memref<18x16xf32, #tpu.memory_space<vmem>>, %arg7: memref<3x144x72xbf16, #tpu.memory_space<vmem>>, %arg8: memref<1x72xf32, #tpu.memory_space<vmem>>, %arg9: memref<1x72xf32, #tpu.memory_space<vmem>>, %arg10: memref<3x72x128xbf16, #tpu.memory_space<vmem>>, %arg11: memref<1x128xf32, #tpu.memory_space<vmem>>, %arg12: memref<1x128xf32, #tpu.memory_space<vmem>>, %arg13: memref<1x16x128xf32, #tpu.memory_space<vmem>>) attributes {dimension_semantics = [#tpu.dimension_semantics<parallel>], iteration_bounds = array<i64: 2>, scalar_prefetch = 0 : i64, scratch_operands = 0 : i64, tpu.core_type = #tpu.core_type<tc>, window_params = [{transform_indices = @transform_0, window_bounds = array<i64: 1, 8, 32>}, {transform_indices = @transform_1, window_bounds = array<i64: 1, 16, 64>}, {pipeline_mode = #tpu.pipeline_mode<synchronous>, transform_indices = @transform_2, window_bounds = array<i64: 18, 8>}, {pipeline_mode = #tpu.pipeline_mode<synchronous>, transform_indices = @transform_3, window_bounds = array<i64: 32, 144>}, {pipeline_mode = #tpu.pipeline_mode<synchronous>, transform_indices = @transform_4, window_bounds = array<i64: 64, 144>}, {pipeline_mode = #tpu.pipeline_mode<synchronous>, transform_indices = @transform_5, window_bounds = array<i64: 18, 16>}, {pipeline_mode = #tpu.pipeline_mode<synchronous>, transform_indices = @transform_6, window_bounds = array<i64: 3, 144, 72>}, {pipeline_mode = #tpu.pipeline_mode<synchronous>, transform_indices = @transform_7, window_bounds = array<i64: 1, 72>}, {pipeline_mode = #tpu.pipeline_mode<synchronous>, transform_indices = @transform_8, window_bounds = array<i64: 1, 72>}, {pipeline_mode = #tpu.pipeline_mode<synchronous>, transform_indices = @transform_9, window_bounds = array<i64: 3, 72, 128>}, {pipeline_mode = #tpu.pipeline_mode<synchronous>, transform_indices = @transform_10, window_bounds = array<i64: 1, 128>}, {pipeline_mode = #tpu.pipeline_mode<synchronous>, transform_indices = @transform_11, window_bounds = array<i64: 1, 128>}, {transform_indices = @transform_12, window_bounds = array<i64: 1, 16, 128>}]} {
    %c0 = arith.constant 0 : index
    %c0_0 = arith.constant 0 : index
    %c0_1 = arith.constant 0 : index
    %0 = vector.load %arg1[%c0, %c0_0, %c0_1] : memref<1x8x32xf32, #tpu.memory_space<vmem>>, vector<1x8x32xf32>
    %1 = vector.shape_cast %0 : vector<1x8x32xf32> to vector<8x32xf32>
    %c0_2 = arith.constant 0 : index
    %c0_3 = arith.constant 0 : index
    %2 = vector.load %arg4[%c0_2, %c0_3] : memref<32x144xf32, #tpu.memory_space<vmem>>, vector<32x144xf32>
    %cst = arith.constant dense<0.000000e+00> : vector<8x144xf32>
    %3 = tpu.matmul %1, %2, %cst {dimension_numbers = #tpu.dot_dimension_numbers<[1], [0], [0], [1], [0, 0, 1, 1], [], []>} : vector<8x32xf32>, vector<32x144xf32>, vector<8x144xf32> -> vector<8x144xf32>
    %c0_4 = arith.constant 0 : index
    %c0_5 = arith.constant 0 : index
    %4 = vector.load %arg3[%c0_4, %c0_5] : memref<18x8xf32, #tpu.memory_space<vmem>>, vector<18x8xf32>
    %cst_6 = arith.constant dense<0.000000e+00> : vector<18x144xf32>
    %5 = tpu.matmul %4, %3, %cst_6 {dimension_numbers = #tpu.dot_dimension_numbers<[1], [0], [0], [1], [0, 0, 1, 1], [], []>} : vector<18x8xf32>, vector<8x144xf32>, vector<18x144xf32> -> vector<18x144xf32>
    %c0_7 = arith.constant 0 : index
    %c0_8 = arith.constant 0 : index
    %c0_9 = arith.constant 0 : index
    %6 = vector.load %arg2[%c0_7, %c0_8, %c0_9] : memref<1x16x64xf32, #tpu.memory_space<vmem>>, vector<1x16x64xf32>
    %7 = vector.shape_cast %6 : vector<1x16x64xf32> to vector<16x64xf32>
    %c0_10 = arith.constant 0 : index
    %c0_11 = arith.constant 0 : index
    %8 = vector.load %arg5[%c0_10, %c0_11] : memref<64x144xf32, #tpu.memory_space<vmem>>, vector<64x144xf32>
    %cst_12 = arith.constant dense<0.000000e+00> : vector<16x144xf32>
    %9 = tpu.matmul %7, %8, %cst_12 {dimension_numbers = #tpu.dot_dimension_numbers<[1], [0], [0], [1], [0, 0, 1, 1], [], []>} : vector<16x64xf32>, vector<64x144xf32>, vector<16x144xf32> -> vector<16x144xf32>
    %c0_13 = arith.constant 0 : index
    %c0_14 = arith.constant 0 : index
    %10 = vector.load %arg6[%c0_13, %c0_14] : memref<18x16xf32, #tpu.memory_space<vmem>>, vector<18x16xf32>
    %cst_15 = arith.constant dense<0.000000e+00> : vector<18x144xf32>
    %11 = tpu.matmul %10, %9, %cst_15 {dimension_numbers = #tpu.dot_dimension_numbers<[1], [0], [0], [1], [0, 0, 1, 1], [], []>} : vector<18x16xf32>, vector<16x144xf32>, vector<18x144xf32> -> vector<18x144xf32>
    %12 = arith.addf %5, %11 : vector<18x144xf32>
    %13 = vector.extract_strided_slice %12 {offsets = [0, 0], sizes = [16, 144], strides = [1, 1]} : vector<18x144xf32> to vector<16x144xf32>
    %14 = arith.truncf %13 : vector<16x144xf32> to vector<16x144xbf16>
    %c0_16 = arith.constant 0 : index
    %c0_17 = arith.constant 0 : index
    %c0_18 = arith.constant 0 : index
    %15 = vector.load %arg7[%c0_16, %c0_17, %c0_18] : memref<3x144x72xbf16, #tpu.memory_space<vmem>>, vector<1x144x72xbf16>
    %16 = vector.shape_cast %15 : vector<1x144x72xbf16> to vector<144x72xbf16>
    %cst_19 = arith.constant dense<0.000000e+00> : vector<16x72xf32>
    %17 = tpu.matmul %14, %16, %cst_19 {dimension_numbers = #tpu.dot_dimension_numbers<[1], [0], [0], [1], [0, 0, 1, 1], [], []>} : vector<16x144xbf16>, vector<144x72xbf16>, vector<16x72xf32> -> vector<16x72xf32>
    %18 = vector.extract_strided_slice %12 {offsets = [1, 0], sizes = [16, 144], strides = [1, 1]} : vector<18x144xf32> to vector<16x144xf32>
    %19 = arith.truncf %18 : vector<16x144xf32> to vector<16x144xbf16>
    %c1 = arith.constant 1 : index
    %c0_20 = arith.constant 0 : index
    %c0_21 = arith.constant 0 : index
    %20 = vector.load %arg7[%c1, %c0_20, %c0_21] : memref<3x144x72xbf16, #tpu.memory_space<vmem>>, vector<1x144x72xbf16>
    %21 = vector.shape_cast %20 : vector<1x144x72xbf16> to vector<144x72xbf16>
    %cst_22 = arith.constant dense<0.000000e+00> : vector<16x72xf32>
    %22 = tpu.matmul %19, %21, %cst_22 {dimension_numbers = #tpu.dot_dimension_numbers<[1], [0], [0], [1], [0, 0, 1, 1], [], []>} : vector<16x144xbf16>, vector<144x72xbf16>, vector<16x72xf32> -> vector<16x72xf32>
    %23 = arith.addf %17, %22 : vector<16x72xf32>
    %24 = vector.extract_strided_slice %12 {offsets = [2, 0], sizes = [16, 144], strides = [1, 1]} : vector<18x144xf32> to vector<16x144xf32>
    %25 = arith.truncf %24 : vector<16x144xf32> to vector<16x144xbf16>
    %c2 = arith.constant 2 : index
    %c0_23 = arith.constant 0 : index
    %c0_24 = arith.constant 0 : index
    %26 = vector.load %arg7[%c2, %c0_23, %c0_24] : memref<3x144x72xbf16, #tpu.memory_space<vmem>>, vector<1x144x72xbf16>
    %27 = vector.shape_cast %26 : vector<1x144x72xbf16> to vector<144x72xbf16>
    %cst_25 = arith.constant dense<0.000000e+00> : vector<16x72xf32>
    %28 = tpu.matmul %25, %27, %cst_25 {dimension_numbers = #tpu.dot_dimension_numbers<[1], [0], [0], [1], [0, 0, 1, 1], [], []>} : vector<16x144xbf16>, vector<144x72xbf16>, vector<16x72xf32> -> vector<16x72xf32>
    %29 = arith.addf %23, %28 : vector<16x72xf32>
    %c0_26 = arith.constant 0 : index
    %c0_27 = arith.constant 0 : index
    %30 = vector.load %arg8[%c0_26, %c0_27] : memref<1x72xf32, #tpu.memory_space<vmem>>, vector<1x72xf32>
    %31 = vector.broadcast %30 : vector<1x72xf32> to vector<16x72xf32>
    %32 = arith.mulf %29, %31 : vector<16x72xf32>
    %c0_28 = arith.constant 0 : index
    %c0_29 = arith.constant 0 : index
    %33 = vector.load %arg9[%c0_28, %c0_29] : memref<1x72xf32, #tpu.memory_space<vmem>>, vector<1x72xf32>
    %34 = vector.broadcast %33 : vector<1x72xf32> to vector<16x72xf32>
    %35 = arith.addf %32, %34 : vector<16x72xf32>
    %cst_30 = arith.constant 0.000000e+00 : f32
    %36 = vector.broadcast %cst_30 : f32 to vector<16x72xf32>
    %37 = arith.maximumf %35, %36 : vector<16x72xf32>
    %c0_31 = arith.constant 0 : index
    %c0_32 = arith.constant 0 : index
    %38 = vector.load %arg6[%c0_31, %c0_32] : memref<18x16xf32, #tpu.memory_space<vmem>>, vector<18x16xf32>
    %cst_33 = arith.constant dense<0.000000e+00> : vector<18x72xf32>
    %39 = tpu.matmul %38, %37, %cst_33 {dimension_numbers = #tpu.dot_dimension_numbers<[1], [0], [0], [1], [0, 0, 1, 1], [], []>} : vector<18x16xf32>, vector<16x72xf32>, vector<18x72xf32> -> vector<18x72xf32>
    %40 = vector.extract_strided_slice %39 {offsets = [0, 0], sizes = [16, 72], strides = [1, 1]} : vector<18x72xf32> to vector<16x72xf32>
    %41 = arith.truncf %40 : vector<16x72xf32> to vector<16x72xbf16>
    %c0_34 = arith.constant 0 : index
    %c0_35 = arith.constant 0 : index
    %c0_36 = arith.constant 0 : index
    %42 = vector.load %arg10[%c0_34, %c0_35, %c0_36] : memref<3x72x128xbf16, #tpu.memory_space<vmem>>, vector<1x72x128xbf16>
    %43 = vector.shape_cast %42 : vector<1x72x128xbf16> to vector<72x128xbf16>
    %cst_37 = arith.constant dense<0.000000e+00> : vector<16x128xf32>
    %44 = tpu.matmul %41, %43, %cst_37 {dimension_numbers = #tpu.dot_dimension_numbers<[1], [0], [0], [1], [0, 0, 1, 1], [], []>} : vector<16x72xbf16>, vector<72x128xbf16>, vector<16x128xf32> -> vector<16x128xf32>
    %45 = arith.truncf %37 : vector<16x72xf32> to vector<16x72xbf16>
    %c1_38 = arith.constant 1 : index
    %c0_39 = arith.constant 0 : index
    %c0_40 = arith.constant 0 : index
    %46 = vector.load %arg10[%c1_38, %c0_39, %c0_40] : memref<3x72x128xbf16, #tpu.memory_space<vmem>>, vector<1x72x128xbf16>
    %47 = vector.shape_cast %46 : vector<1x72x128xbf16> to vector<72x128xbf16>
    %cst_41 = arith.constant dense<0.000000e+00> : vector<16x128xf32>
    %48 = tpu.matmul %45, %47, %cst_41 {dimension_numbers = #tpu.dot_dimension_numbers<[1], [0], [0], [1], [0, 0, 1, 1], [], []>} : vector<16x72xbf16>, vector<72x128xbf16>, vector<16x128xf32> -> vector<16x128xf32>
    %49 = arith.addf %44, %48 : vector<16x128xf32>
    %50 = vector.extract_strided_slice %39 {offsets = [2, 0], sizes = [16, 72], strides = [1, 1]} : vector<18x72xf32> to vector<16x72xf32>
    %51 = arith.truncf %50 : vector<16x72xf32> to vector<16x72xbf16>
    %c2_42 = arith.constant 2 : index
    %c0_43 = arith.constant 0 : index
    %c0_44 = arith.constant 0 : index
    %52 = vector.load %arg10[%c2_42, %c0_43, %c0_44] : memref<3x72x128xbf16, #tpu.memory_space<vmem>>, vector<1x72x128xbf16>
    %53 = vector.shape_cast %52 : vector<1x72x128xbf16> to vector<72x128xbf16>
    %cst_45 = arith.constant dense<0.000000e+00> : vector<16x128xf32>
    %54 = tpu.matmul %51, %53, %cst_45 {dimension_numbers = #tpu.dot_dimension_numbers<[1], [0], [0], [1], [0, 0, 1, 1], [], []>} : vector<16x72xbf16>, vector<72x128xbf16>, vector<16x128xf32> -> vector<16x128xf32>
    %55 = arith.addf %49, %54 : vector<16x128xf32>
    %c0_46 = arith.constant 0 : index
    %c0_47 = arith.constant 0 : index
    %56 = vector.load %arg11[%c0_46, %c0_47] : memref<1x128xf32, #tpu.memory_space<vmem>>, vector<1x128xf32>
    %57 = vector.broadcast %56 : vector<1x128xf32> to vector<16x128xf32>
    %58 = arith.mulf %55, %57 : vector<16x128xf32>
    %c0_48 = arith.constant 0 : index
    %c0_49 = arith.constant 0 : index
    %59 = vector.load %arg12[%c0_48, %c0_49] : memref<1x128xf32, #tpu.memory_space<vmem>>, vector<1x128xf32>
    %60 = vector.broadcast %59 : vector<1x128xf32> to vector<16x128xf32>
    %61 = arith.addf %58, %60 : vector<16x128xf32>
    %cst_50 = arith.constant 0.000000e+00 : f32
    %62 = vector.broadcast %cst_50 : f32 to vector<16x128xf32>
    %63 = arith.maximumf %61, %62 : vector<16x128xf32>
    %c0_51 = arith.constant 0 : index
    %c0_52 = arith.constant 0 : index
    %c0_53 = arith.constant 0 : index
    %64 = vector.load %arg13[%c0_51, %c0_52, %c0_53] : memref<1x16x128xf32, #tpu.memory_space<vmem>>, vector<1x16x128xf32>
    %65 = vector.shape_cast %64 : vector<1x16x128xf32> to vector<16x128xf32>
    %66 = vector.shape_cast %63 : vector<16x128xf32> to vector<1x16x128xf32>
    tpu.vector_store %arg13[%c0_51, %c0_52, %c0_53], %66 {strides = array<i32>} : memref<1x16x128xf32, #tpu.memory_space<vmem>>, vector<1x16x128xf32>,
    return
  }
  func.func @transform_0(%arg0: i32) -> (i32, i32, i32) {
    %c0_i32 = arith.constant 0 : i32
    %c0_i32_0 = arith.constant 0 : i32
    %c0_i32_1 = arith.constant 0 : i32
    return %arg0, %c0_i32, %c0_i32_0 : i32, i32, i32
  }
  func.func @transform_1(%arg0: i32) -> (i32, i32, i32) {
    %c0_i32 = arith.constant 0 : i32
    %c0_i32_0 = arith.constant 0 : i32
    %c0_i32_1 = arith.constant 0 : i32
    return %arg0, %c0_i32, %c0_i32_0 : i32, i32, i32
  }
  func.func @transform_2(%arg0: i32) -> (i32, i32) {
    %c0_i32 = arith.constant 0 : i32
    %c0_i32_0 = arith.constant 0 : i32
    %c0_i32_1 = arith.constant 0 : i32
    return %c0_i32, %c0_i32_0 : i32, i32
  }
  func.func @transform_3(%arg0: i32) -> (i32, i32) {
    %c0_i32 = arith.constant 0 : i32
    %c0_i32_0 = arith.constant 0 : i32
    %c0_i32_1 = arith.constant 0 : i32
    return %c0_i32, %c0_i32_0 : i32, i32
  }
  func.func @transform_4(%arg0: i32) -> (i32, i32) {
    %c0_i32 = arith.constant 0 : i32
    %c0_i32_0 = arith.constant 0 : i32
    %c0_i32_1 = arith.constant 0 : i32
    return %c0_i32, %c0_i32_0 : i32, i32
  }
  func.func @transform_5(%arg0: i32) -> (i32, i32) {
    %c0_i32 = arith.constant 0 : i32
    %c0_i32_0 = arith.constant 0 : i32
    %c0_i32_1 = arith.constant 0 : i32
    return %c0_i32, %c0_i32_0 : i32, i32
  }
  func.func @transform_6(%arg0: i32) -> (i32, i32, i32) {
    %c0_i32 = arith.constant 0 : i32
    %c0_i32_0 = arith.constant 0 : i32
    %c0_i32_1 = arith.constant 0 : i32
    %c0_i32_2 = arith.constant 0 : i32
    return %c0_i32, %c0_i32_0, %c0_i32_1 : i32, i32, i32
  }
  func.func @transform_7(%arg0: i32) -> (i32, i32) {
    %c0_i32 = arith.constant 0 : i32
    %c0_i32_0 = arith.constant 0 : i32
    %c0_i32_1 = arith.constant 0 : i32
    return %c0_i32, %c0_i32_0 : i32, i32
  }
  func.func @transform_8(%arg0: i32) -> (i32, i32) {
    %c0_i32 = arith.constant 0 : i32
    %c0_i32_0 = arith.constant 0 : i32
    %c0_i32_1 = arith.constant 0 : i32
    return %c0_i32, %c0_i32_0 : i32, i32
  }
  func.func @transform_9(%arg0: i32) -> (i32, i32, i32) {
    %c0_i32 = arith.constant 0 : i32
    %c0_i32_0 = arith.constant 0 : i32
    %c0_i32_1 = arith.constant 0 : i32
    %c0_i32_2 = arith.constant 0 : i32
    return %c0_i32, %c0_i32_0, %c0_i32_1 : i32, i32, i32
  }
  func.func @transform_10(%arg0: i32) -> (i32, i32) {
    %c0_i32 = arith.constant 0 : i32
    %c0_i32_0 = arith.constant 0 : i32
    %c0_i32_1 = arith.constant 0 : i32
    return %c0_i32, %c0_i32_0 : i32, i32
  }
  func.func @transform_11(%arg0: i32) -> (i32, i32) {
    %c0_i32 = arith.constant 0 : i32
    %c0_i32_0 = arith.constant 0 : i32
    %c0_i32_1 = arith.constant 0 : i32
    return %c0_i32, %c0_i32_0 : i32, i32
  }
  func.func @transform_12(%arg0: i32) -> (i32, i32, i32) {
    %c0_i32 = arith.constant 0 : i32
    %c0_i32_0 = arith.constant 0 : i32
    %c0_i32_1 = arith.constant 0 : i32
    return %arg0, %c0_i32, %c0_i32_0 : i32, i32, i32
  }
}

</mosaic_0001>

<bundles_post_ra>
// kernel: up_forward.1
= control target key start
LH: loop header
LB: loop body
LE: loop exit
PB: predicated region body
PF: predicated region fallthrough
CT: control target
= control target key end

     0   :  { %s1720_s21 = smov 0   ;;  %s2018_s0 = inlined_call_operand.vmem [shape: f32[2,8,32], index: 0, kind: input, shape index: {}]   ;;  %s2019_s1 = inlined_call_operand.vmem [shape: f32[2,16,64], index: 1, kind: input, shape index: {}]   ;;  %s2020_s2 = inlined_call_operand.vmem [shape: f32[18,8], index: 2, kind: input, shape index: {}]   ;;  %s2021_s3 = inlined_call_operand.vmem [shape: f32[32,144], index: 3, kind: input, shape index: {}]   ;;  %s2022_s4 = inlined_call_operand.vmem [shape: f32[64,144], index: 4, kind: input, shape index: {}]   ;;  %s2023_s5 = inlined_call_operand.vmem [shape: f32[18,16], index: 5, kind: input, shape index: {}]   ;;  %s2024_s6 = inlined_call_operand.vmem [shape: bf16[3,144,72], index: 6, kind: input, shape index: {}]   ;;  %s2025_s7 = inlined_call_operand.vmem [shape: f32[1,72], index: 7, kind: input, shape index: {}]   ;;  %s2026_s8 = inlined_call_operand.vmem [shape: f32[1,72], index: 8, kind: input, shape index: {}]   ;;  %s2027_s9 = inlined_call_operand.vmem [shape: bf16[3,72,128], index: 9, kind: input, shape index: {}]   ;;  %s2028_s10 = inlined_call_operand.vmem [shape: f32[1,128], index: 10, kind: input, shape index: {}]   ;;  %s2029_s11 = inlined_call_operand.vmem [shape: f32[1,128], index: 11, kind: input, shape index: {}]   ;;  %s2030_s12 = inlined_call_operand.vmem [shape: f32[2,16,128], index: 12, kind: output, shape index: {}]  }
   0x1 LB: > { %s1345_s22 = sadd.s32 4294967295, %s1653_s21   ;;  %p1349_p0 = scmp.ge.s32.totalorder %s1653_s21, 1  ;;  %s1653_s21 = sphi %s1720_s21, %s22_s21  }
   0x2   : > { %p371_p1 = scmp.lt.s32.totalorder %s1653_s21, 3 }
   0x4   : > { %p372_p2 = pnand %p1349_p0, %p371_p1 }
   0x5   : > { %p417_p3 = scmp.lt.s32.totalorder (!%p372_p2), %s1345_s22, 1 }
   0x6   : > { %375 = sbr.rel (%p372_p2) target bundleno = 780 (0x30c), region = 68 }
   0xb   : > { %v504_v0 = vld [vmem:[%s2022_s4 + $0x70] sm:$0xff]  ;;  %v505_v1 = vld [vmem:[%s2022_s4 + $0x78] sm:$0xff]  ;;  %v502_v2 = vld [vmem:[%s2022_s4 + $0x60] sm:$0xff]  ;;  %s2032_s22 = smov (!%p417_p3, %s1345_s22), 1  ;;  %vm441_vm0 = vcmask 261120   ;;  %vm506_vm1 = vcmask 523264  }
   0xc   : > { %521 = vmatpush.msra.mxu2 %v504_v0  ;;  %544 = vmatpush.msra.mxu3 %v505_v1  ;;  %v503_v3 = vld [vmem:[%s2022_s4 + $0x68] sm:$0xff]  ;;  %v500_v4 = vld [vmem:[%s2022_s4 + $0x50] sm:$0xff]  ;;  %v501_v5 = vld [vmem:[%s2022_s4 + $0x58] sm:$0xff]  ;;  %s1350_s29 = sshll.u32 %s2032_s22, 3  ;;  %s1594_s20 = sshll.u32 %s2032_s22, 4  ;;  %vm624_vm2 = vcmask 64512  }
   0xd   : > { %v498_v6 = vld [vmem:[%s2022_s4 + $0x40] sm:$0xff]  ;;  %v499_v7 = vld [vmem:[%s2022_s4 + $0x48] sm:$0xff]  ;;  %v496_v8 = vld [vmem:[%s2022_s4 + $0x30] sm:$0xff]  ;;  %s420_s18 = scalar_lea.vmem %s2018_s0, %s1350_s29  ;;  %s425_s28 = scalar_lea.vmem %s2019_s1, %s1594_s20  ;;  %vm562_vm3 = vcmask 130048   ;;  %vm945_vm4 = vcmask 1046528   ;;  %vm1132_vm6 = vcmask 1043456  }
   0xe   : > { %522 = vmatpush.msra.mxu2 %v502_v2  ;;  %545 = vmatpush.msra.mxu3 %v503_v3  ;;  %v439_v9 = vld [vmem:[%s2021_s3 + $0x30] sm:$0xff]  ;;  %v440_v10 = vld [vmem:[%s2021_s3 + $0x38] sm:$0xff]  ;;  %v437_v12 = vld [vmem:[%s2021_s3 + $0x20] sm:$0xff]  ;;  %vm727_vm5 = vsmask.f32 7424  ;;  %vm1128_vm7 = vcmask 588800   ;;  %s430_s16 = scalar_lea.vmem %s2030_s12, %s1594_s20 }
   0xf   : > { %v497_v11 = vld [vmem:[%s2022_s4 + $0x38] sm:$0xff]  ;;  %457 = vmatpush.msra.mxu0 %v439_v9  ;;  %477 = vmatpush.msra.mxu1 %v440_v10  ;;  %v438_v13 = vld [vmem:[%s2021_s3 + $0x28] sm:$0xff]  ;;  %v494_v14 = vld [vmem:[%s2022_s4 + $0x20] sm:$0xff] }
  0x10   : > { %523 = vmatpush.msra.mxu2 %v500_v4  ;;  %546 = vmatpush.msra.mxu3 %v501_v5  ;;  %v435_v15 = vld [vmem:[%s2021_s3 + $0x10] sm:$0xff]  ;;  %v436_v16 = vld [vmem:[%s2021_s3 + $0x18] sm:$0xff]  ;;  %v495_v17 = vld [vmem:[%s2022_s4 + $0x28] sm:$0xff] }
  0x11   : > { %458 = vmatpush.msra.mxu0 %v437_v12  ;;  %478 = vmatpush.msra.mxu1 %v438_v13  ;;  %v433_v18 = vld [vmem:[%s2021_s3] sm:$0xff]  ;;  %v434_v19 = vld [vmem:[%s2021_s3 + $0x8] sm:$0xff]  ;;  %v492_v20 = vld [vmem:[%s2022_s4 + $0x10] sm:$0xff] }
  0x12   : > { %524 = vmatpush.msra.mxu2 %v498_v6  ;;  %547 = vmatpush.msra.mxu3 %v499_v7  ;;  %v493_v21 = vld [vmem:[%s2022_s4 + $0x18] sm:$0xff]  ;;  %v432_v22 = vld [vmem:[%s420_s18] sm:$0xff]  ;;  %v491_v24 = vld [vmem:[%s2022_s4 + $0x8] sm:$0xff] }
  0x13   : > { %459 = vmatpush.msra.mxu0 %v435_v15  ;;  %479 = vmatpush.msra.mxu1 %v436_v16  ;;  %v490_v23 = vld [vmem:[%s2022_s4] sm:$0xff]  ;;  %v489_v26 = vld [vmem:[%s425_s28 + $0x8] sm:$0xff]  ;;  %v1603_v30 = vld [vmem:[%s2024_s6 + $0x38] sm:$0xff] }
  0x14   : > { %525 = vmatpush.msra.mxu2 %v496_v8  ;;  %548 = vmatpush.msra.mxu3 %v497_v11  ;;  %v488_v25 = vld [vmem:[%s425_s28] sm:$0xff]  ;;  %v1621_v31 = vld [vmem:[%s2024_s6 + $0xc8] sm:$0xff]  ;;  %v1602_v33 = vld [vmem:[%s2024_s6 + $0x30] sm:$0xff] }
  0x15   : > { %460 = vmatpush.msra.mxu0 %v433_v18  ;;  %480 = vmatpush.msra.mxu1 %v434_v19  ;;  %v485_v27 = vld [vmem:[%s2020_s2] sm:$0xff]  ;;  %v486_v32 = vld [vmem:[%s2020_s2 + $0x8] sm:$0xff]  ;;  %v487_v38 = vld [vmem:[%s2020_s2 + $0x10] sm:$0x3] }
  0x16   : > { %526 = vmatpush.msra.mxu2 %v494_v14  ;;  %549 = vmatpush.msra.mxu3 %v495_v17  ;;  %v1620_v34 = vld [vmem:[%s2024_s6 + $0xc0] sm:$0xff]  ;;  %v1601_v37 = vld [vmem:[%s2024_s6 + $0x28] sm:$0xff]  ;;  %v1599_v44 = vld [vmem:[%s2024_s6 + $0x18] sm:$0xff] }
  0x17   : > { %1355 = vmatmul.msk.f32.vlgmr.msra.gmra.mxu0 %vm441_vm0, %v432_v22  ;;  %1356 = vmatmul.msk.f32.vlgmr.msra.gmra.mxu1 %vm441_vm0, %v432_v22  ;;  %v1843_v41 = vld [vmem:[%s2023_s5] sm:$0xff]  ;;  %v1611_v45 = vld [vmem:[%s2024_s6 + $0x78] sm:$0xff]  ;;  %v1866_v46 = vld [vmem:[%s2023_s5 + $0x8] sm:$0xff] }
  0x18   : > { %527 = vmatpush.msra.mxu2 %v492_v20  ;;  %550 = vmatpush.msra.mxu3 %v493_v21  ;;  %v1600_v42 = vld [vmem:[%s2024_s6 + $0x20] sm:$0xff]  ;;  %v1875_v47 = vld [vmem:[%s2023_s5 + $0x10] sm:$0x3]  ;;  %v1619_v48 = vld [vmem:[%s2024_s6 + $0xb8] sm:$0xff] }
  0x19   : > { %v1612_v43 = vld [vmem:[%s2024_s6 + $0x80] sm:$0xff]  ;;  %v1598_v49 = vld [vmem:[%s2024_s6 + $0x10] sm:$0xff]  ;;  %v1597_v52 = vld [vmem:[%s2024_s6 + $0x8] sm:$0xff] }
  0x1a   : > { %528 = vmatpush.msra.mxu2 %v490_v23  ;;  %551 = vmatpush.msra.mxu3 %v491_v24  ;;  %v1610_v50 = vld [vmem:[%s2024_s6 + $0x70] sm:$0xff]  ;;  %v1609_v53 = vld [vmem:[%s2024_s6 + $0x68] sm:$0xff]  ;;  %v1596_v55 = vld [vmem:[%s2024_s6] sm:$0xff] }
  0x1b   : > { %1357 = vmatmul.msk.f32.vlgmr.msra.gmra.mxu2 %vm506_vm1, %v488_v25  ;;  %1359 = vmatmul.msk.f32.vlgmr.msra.gmra.mxu3 %vm506_vm1, %v488_v25  ;;  %v1618_v51 = vld [vmem:[%s2024_s6 + $0xb0] sm:$0xff]  ;;  %v1617_v54 = vld [vmem:[%s2024_s6 + $0xa8] sm:$0xff]  ;;  %v1608_v56 = vld [vmem:[%s2024_s6 + $0x60] sm:$0xff] }
  0x1c   : > { %v1616_v57 = vld [vmem:[%s2024_s6 + $0xa0] sm:$0xff]  ;;  %v1607_v58 = vld [vmem:[%s2024_s6 + $0x58] sm:$0xff]  ;;  %v1613_v59 = vld [vmem:[%s2024_s6 + $0x88] sm:$0xff] }
  0x1d   : > { %v1615_v60 = vld [vmem:[%s2024_s6 + $0x98] sm:$0xff]  ;;  %v1606_v61 = vld [vmem:[%s2024_s6 + $0x50] sm:$0xff]  ;;  %v1605_v63 = vld [vmem:[%s2024_s6 + $0x48] sm:$0xff] }
  0x1e   : > { %v1614_v62 = vld [vmem:[%s2024_s6 + $0x90] sm:$0xff]  ;;  %v1604_v2 = vld [vmem:[%s2024_s6 + $0x40] sm:$0xff] }
  0x1f   : > { %v1622_v3 = vld [vmem:[%s2024_s6 + $0xd0] sm:$0xff] }
  0x23   : > { %1358 = vmatmul.msk.f32.gmra.mxu2 %vm506_vm1, %v489_v26  ;;  %1360 = vmatmul.msk.f32.gmra.mxu3 %vm506_vm1, %v489_v26 }
  0x94   : > { %v462_v28 = vpop.f32.mrf.mxu0  ;;  %v482_v29 = vpop.f32.mrf.mxu1 }
  0x95   : > { %649 = vmatpush.msrb.mxu2 %v462_v28  ;;  %675 = vmatpush.msrb.mxu3 %v482_v29 }
  0x96   : > { %1367 = vmatmul.msk.f32.vlgmr.msrb.gmra.mxu2 %vm624_vm2, %v485_v27  ;;  %1370 = vmatmul.msk.f32.vlgmr.msrb.gmra.mxu3 %vm624_vm2, %v485_v27 }
  0x97   : > { %894 = vmatpush.bf16.msra.mxu2 %v1603_v30  ;;  %1010 = vmatpush.bf16.msra.mxu3 %v1621_v31 }
  0x9b   : > { %895 = vmatpush.bf16.msra.mxu2 %v1602_v33  ;;  %1011 = vmatpush.bf16.msra.mxu3 %v1620_v34 }
  0x9e   : > { %v530_v35 = vpop.f32.mrf.mxu2  ;;  %v553_v36 = vpop.f32.mrf.mxu3  ;;  %1368 = vmatmul.msk.f32.gmra.mxu2 %vm624_vm2, %v486_v32  ;;  %1371 = vmatmul.msk.f32.gmra.mxu3 %vm624_vm2, %v486_v32 }
  0x9f   : > { %896 = vmatpush.bf16.msra.mxu2 %v1601_v37  ;;  %1012 = vmatpush.bf16.msra.mxu3 %v1619_v48 }
  0xa3   : > { %897 = vmatpush.bf16.msra.mxu2 %v1600_v42  ;;  %1013 = vmatpush.bf16.msra.mxu3 %v1618_v51  ;;  %v1630_v51 = vld [vmem:[%s2027_s9 + $0x3c] sm:$0xff] }
  0xa6   : > { %v533_v39 = vpop.f32.mrf.mxu2  ;;  %v556_v40 = vpop.f32.mrf.mxu3  ;;  %1369 = vmatmul.msk.f32.gmra.mxu2 %vm624_vm2, %v487_v38  ;;  %1372 = vmatmul.msk.f32.gmra.mxu3 %vm624_vm2, %v487_v38 }
  0xa7   : > { %586 = vmatpush.msrb.mxu0 %v533_v39  ;;  %612 = vmatpush.msrb.mxu1 %v556_v40 }
  0xa8   : > { %898 = vmatpush.bf16.msra.mxu2 %v1599_v44  ;;  %1014 = vmatpush.bf16.msra.mxu3 %v1617_v54 }
  0xa9   : > { %587 = vmatpush.msrb.mxu0 %v530_v35  ;;  %613 = vmatpush.msrb.mxu1 %v553_v36 }
  0xaa   : > { %1361 = vmatmul.msk.f32.vlgmr.msrb.gmra.mxu0 %vm562_vm3, %v1843_v41  ;;  %1364 = vmatmul.msk.f32.vlgmr.msrb.gmra.mxu1 %vm562_vm3, %v1843_v41 }
  0xab   : > { %810 = vmatpush.bf16.msra.mxu0 %v1612_v43  ;;  %831 = vmatpush.bf16.msra.mxu1 %v1613_v59 }
  0xac   : > { %899 = vmatpush.bf16.msra.mxu2 %v1598_v49  ;;  %1015 = vmatpush.bf16.msra.mxu3 %v1616_v57 }
  0xaf   : > { %811 = vmatpush.bf16.msra.mxu0 %v1611_v45  ;;  %915 = vmatpush.bf16.msrb.mxu1 %v1604_v2  ;;  %v1531_v45 = vld [vmem:[%s2027_s9 + $0x44] sm:$0xf] }
  0xb0   : > { %900 = vmatpush.bf16.msra.mxu2 %v1597_v52  ;;  %1016 = vmatpush.bf16.msra.mxu3 %v1615_v60  ;;  %v1118_v48 = vunpack.c.l.b16 %v1531_v45  ;;  %v1629_v52 = vld [vmem:[%s2027_s9 + $0x34] sm:$0xff] }
  0xb2   : > { %1362 = vmatmul.msk.f32.gmra.mxu0 %vm562_vm3, %v1866_v46  ;;  %1365 = vmatmul.msk.f32.gmra.mxu1 %vm562_vm3, %v1866_v46  ;;  %v1123_v49 = vpack.c.b16 %v1118_v48, %v1118_v48 }
  0xb3   : > { %812 = vmatpush.bf16.msra.mxu0 %v1610_v50 }
  0xb4   : > { %901 = vmatpush.bf16.msra.mxu2 %v1596_v55  ;;  %1017 = vmatpush.bf16.msra.mxu3 %v1614_v62  ;;  %v1134_v50 = vsel %vm1132_vm6, %v1123_v49, 0  ;;  %v1645_v49 = vld [vmem:[%s2028_s10] ss:$0 sm:$0xff] }
  0xb7   : > { %813 = vmatpush.bf16.msra.mxu0 %v1609_v53  ;;  %v1628_v53 = vld [vmem:[%s2027_s9 + $0x2c] sm:$0xff] }
  0xba   : > { %1363 = vmatmul.msk.f32.gmra.mxu0 %vm562_vm3, %v1875_v47  ;;  %1366 = vmatmul.msk.f32.gmra.mxu1 %vm562_vm3, %v1875_v47 }
  0xbb   : > { %814 = vmatpush.bf16.msra.mxu0 %v1608_v56  ;;  %v1627_v56 = vld [vmem:[%s2027_s9 + $0x24] sm:$0xff] }
  0xbf   : > { %815 = vmatpush.bf16.msra.mxu0 %v1607_v58 }
  0xc3   : > { %816 = vmatpush.bf16.msra.mxu0 %v1606_v61 }
  0xc7   : > { %817 = vmatpush.bf16.msra.mxu0 %v1605_v63 }
  0xcb   : > { %1031 = vmatpush.bf16.msrb.mxu0 %v1622_v3 }
 0x119   : > { %v651_v0 = vpop.f32.mrf.mxu2  ;;  %v677_v1 = vpop.f32.mrf.mxu3 }
 0x121   : > { %v654_v6 = vpop.f32.mrf.mxu2  ;;  %v680_v7 = vpop.f32.mrf.mxu3 }
 0x127   : > { %v589_v4 = vpop.f32.mrf.mxu0  ;;  %v615_v5 = vpop.f32.mrf.mxu1 }
 0x128   : > { %v652_v10 = vadd.f32 %v651_v0, %v589_v4  ;;  %v678_v11 = vadd.f32 %v677_v1, %v615_v5  ;;  %v1643_v5 = vld [vmem:[%s2025_s7] ss:$0 sm:$0xff] }
 0x129   : > { %v657_v17 = vpop.f32.mrf.mxu2  ;;  %v683_v18 = vpop.f32.mrf.mxu3 }
 0x12f   : > { %v592_v8 = vpop.f32.mrf.mxu0  ;;  %v618_v9 = vpop.f32.mrf.mxu1 }
 0x130   : > { %v655_v12 = vadd.f32 %v654_v6, %v592_v8  ;;  %v681_v13 = vadd.f32 %v680_v7, %v618_v9  ;;  %v1089_v7 = vld [vmem:[%s2027_s9 + $0x20] sm:$0xf] }
 0x132   : > { %v686_v14 = vpack.c.bf16 %v655_v12, %v652_v10  ;;  %v687_v15 = vpack.c.bf16 %v681_v13, %v678_v11  ;;  %v1167_v10 = vunpack.c.l.b16 %v1089_v7 }
 0x134   : > { %902 = vmatmul.bf16.vlgmr.msra.gmra.mxu2 %v686_v14  ;;  %v743_v16 = vshll.u32 %v687_v15, 16  ;;  %v731_v19 = vshll.u32 %v686_v14, 16  ;;  %v741_v28 = vshrl.u32 %v687_v15, 16  ;;  %v946_v29 = vrot.slane %v686_v14, 1 }
 0x135   : > { %v729_v33 = vshrl.u32 %v686_v14, 16  ;;  %v949_v43 = vrot.slane %v687_v15, 1 }
 0x136   : > { %v745_v24 = vrot.slane %v743_v16, 1  ;;  %v733_v27 = vrot.slane %v731_v19, 1  ;;  %v1644_v16 = vld [vmem:[%s2026_s8] ss:$0 sm:$0xff] }
 0x137   : > { %v595_v20 = vpop.f32.mrf.mxu0  ;;  %v621_v21 = vpop.f32.mrf.mxu1 }
 0x138   : > { %v658_v22 = vadd.f32 %v657_v17, %v595_v20  ;;  %v684_v23 = vadd.f32 %v683_v18, %v621_v21  ;;  %v746_v34 = vor.u32 %v745_v24, %v741_v28  ;;  %v734_v38 = vor.u32 %v733_v27, %v729_v33  ;;  %v1626_v20 = vld [vmem:[%s2027_s9 + $0x18] sm:$0xff]  ;;  %v1574_v27 = vld [vmem:[%s2027_s9 + $0x68] sm:$0xf]  ;;  %v1625_v28 = vld [vmem:[%s2027_s9 + $0x10] sm:$0xff] }
 0x139   : > { %v1172_v17 = vpack.c.b16 %v1167_v10, %v1167_v10  ;;  %v1632_v33 = vld [vmem:[%s2027_s9 + $0x50] sm:$0xff] }
 0x13a   : > { %v706_v25 = vpack.c.bf16 %v658_v22, %v658_v22  ;;  %v707_v26 = vpack.c.bf16 %v684_v23, %v684_v23 }
 0x13b   : > { %v1181_v19 = vsel %vm1132_vm6, %v1172_v17, 0 }
 0x13c   : > { %v736_v30 = vshll.u32 %v706_v25, 16  ;;  %v947_v31 = vrot.slane %v706_v25, 1  ;;  %v748_v32 = vshll.u32 %v707_v26, 16  ;;  %v950_v42 = vrot.slane %v707_v26, 1  ;;  %1186 = vmatpush.bf16.msrb.mxu2 %v1181_v19 }
 0x13e   : > { %v738_v35 = vrot.slane %v736_v30, 1  ;;  %v750_v36 = vrot.slane %v748_v32, 1  ;;  %v948_v37 = vsel %vm945_vm4, %v946_v29, %v947_v31  ;;  %v951_v44 = vsel %vm945_vm4, %v949_v43, %v950_v42  ;;  %v1623_v31 = vld [vmem:[%s2027_s9] sm:$0xff]  ;;  %v1633_v32 = vld [vmem:[%s2027_s9 + $0x58] sm:$0xff] }
 0x13f   : > { %1018 = vmatmul.bf16.vlgmr.msra.gmra.mxu3 %v948_v37  ;;  %v1230_v29 = vunpack.c.l.b16 %v1574_v27 }
 0x140   : > { %v739_v39 = vsel %vm727_vm5, %v734_v38, %v738_v35  ;;  %v751_v40 = vsel %vm727_vm5, %v746_v34, %v750_v36  ;;  %1187 = vmatpush.bf16.msrb.mxu2 %v1626_v20  ;;  %v1631_v34 = vld [vmem:[%s2027_s9 + $0x48] sm:$0xff] }
 0x141   : > { %818 = vmatmul.bf16.vlgmr.msra.gmra.mxu0 %v739_v39  ;;  %1427 = vmatmul.msk.bf16.vlgmr.msra.gmra.mxu1 %vm562_vm3, %v751_v40  ;;  %v1235_v30 = vpack.c.b16 %v1230_v29, %v1230_v29 }
 0x142   : > { %1139 = vmatpush.bf16.msra.mxu0 %v1134_v50 }
 0x144   : > { %1188 = vmatpush.bf16.msrb.mxu2 %v1625_v28 }
 0x146   : > { %1140 = vmatpush.bf16.msra.mxu0 %v1630_v51 }
 0x14a   : > { %1141 = vmatpush.bf16.msra.mxu0 %v1629_v52  ;;  %v1646_v52 = vld [vmem:[%s2029_s11] ss:$0 sm:$0xff] }
 0x14e   : > { %1142 = vmatpush.bf16.msra.mxu0 %v1628_v53 }
 0x151   : > { %1464 = vmatmul.msk.bf16.vlgmr.msrb.gmra.mxu1 %vm562_vm3, %v687_v15  ;;  %1519 = vmatmul.msk.bf16.vlgmr.msrb.gmra.mxu0 %vm562_vm3, %v951_v44 }
 0x152   : > { %1143 = vmatpush.bf16.msra.mxu0 %v1627_v56 }
 0x1b7   : > { %v903_v60 = vpop.f32.mrf.mxu2 }
 0x1be   : > { %v819_v54 = vpop.f32.mrf.mxu0  ;;  %v833_v55 = vpop.f32.mrf.mxu1 }
 0x1bf   : > { %v834_v59 = vadd.f32 %v833_v55, %v819_v54  ;;  %v905_v6 = vpop.f32.mrf.mxu2 }
 0x1c1   : > { %v904_v62 = vadd.f32 %v903_v60, %v834_v59 }
 0x1c2   : > { %v1019_v61 = vpop.f32.mrf.mxu3 }
 0x1c6   : > { %v821_v57 = vpop.f32.mrf.mxu0  ;;  %v835_v58 = vpop.f32.mrf.mxu1 }
 0x1c7   : > { %v836_v3 = vadd.f32 %v835_v58, %v821_v57 }
 0x1c9   : > { %v906_v9 = vadd.f32 %v905_v6, %v836_v3 }
 0x1ca   : > { %v1021_v8 = vpop.f32.mrf.mxu3 }
 0x1ce   : > { %v917_v63 = vpop.f32.mrf.mxu1  ;;  %v1033_v0 = vpop.f32.mrf.mxu0 }
 0x1cf   : > { %v918_v1 = vadd.f32 %v917_v63, %v904_v62  ;;  %v1034_v2 = vadd.f32 %v1033_v0, %v1019_v61 }
 0x1d1   : > { %v1038_v4 = vadd.f32 %v1034_v2, %v918_v1 }
 0x1d3   : > { %v1044_v13 = vmul.f32 %v1643_v5, %v1038_v4 }
 0x1d5   : > { %v1050_v22 = vadd.f32 %v1644_v16, %v1044_v13 }
 0x1d6   : > { %v919_v11 = vpop.f32.mrf.mxu1  ;;  %v1035_v12 = vpop.f32.mrf.mxu0 }
 0x1d7   : > { %v920_v14 = vadd.f32 %v919_v11, %v906_v9  ;;  %v1036_v15 = vadd.f32 %v1035_v12, %v1021_v8  ;;  %v1052_v25 = vmax.f32 %v1050_v22, 0.0 }
 0x1d9   : > { %v1039_v18 = vadd.f32 %v1036_v15, %v920_v14 }
 0x1db   : > { %v1045_v21 = vmul.f32 %v1643_v5, %v1039_v18 }
 0x1dd   : > { %v1051_v23 = vadd.f32 %v1644_v16, %v1045_v21 }
 0x1df   : > { %v1053_v24 = vmax.f32 %v1051_v23, 0.0 }
 0x1e1   : > { %1068 = vmatpush.msra.mxu1 %v1053_v24  ;;  %v1090_v26 = vpack.c.bf16 %v1053_v24, %v1052_v25 }
 0x1e3   : > { %1069 = vmatpush.msra.mxu1 %v1052_v25  ;;  %1548 = vmatmul.msk.bf16.vlgmr.msra.gmra.mxu0 %vm1128_vm7, %v1090_v26 }
 0x1e4   : > { %1520 = vmatmul.msk.f32.vlgmr.msra.gmra.mxu1 %vm562_vm3, %v1843_v41  ;;  %v1624_v41 = vld [vmem:[%s2027_s9 + $0x8] sm:$0xff] }
 0x1e5   : > { %1189 = vmatpush.bf16.msrb.mxu2 %v1624_v41 }
 0x1e9   : > { %1190 = vmatpush.bf16.msrb.mxu2 %v1623_v31 }
 0x1ec   : > { %1521 = vmatmul.msk.f32.gmra.mxu1 %vm562_vm3, %v1866_v46  ;;  %v1244_v46 = vsel %vm1132_vm6, %v1235_v30, 0 }
 0x1ed   : > { %1249 = vmatpush.bf16.msrb.mxu3 %v1244_v46 }
 0x1f4   : > { %1522 = vmatmul.msk.f32.gmra.mxu1 %vm562_vm3, %v1875_v47  ;;  %v1634_v47 = vld [vmem:[%s2027_s9 + $0x60] sm:$0xff] }
 0x1f5   : > { %1250 = vmatpush.bf16.msrb.mxu3 %v1634_v47 }
 0x1f9   : > { %1251 = vmatpush.bf16.msrb.mxu3 %v1633_v32 }
 0x1fd   : > { %1252 = vmatpush.bf16.msrb.mxu3 %v1632_v33 }
 0x201   : > { %1253 = vmatpush.bf16.msrb.mxu3 %v1631_v34 }
 0x260   : > { %v1145_v45 = vpop.f32.mrf.mxu0 }
 0x261   : > { %v1071_v35 = vpop.f32.mrf.mxu1 }
 0x268   : > { %v1147_v56 = vpop.f32.mrf.mxu0 }
 0x269   : > { %v1074_v36 = vpop.f32.mrf.mxu1 }
 0x26a   : > { %v1080_v37 = vpack.c.bf16 %v1074_v36, %v1071_v35 }
 0x26c   : > { %1565 = vmatmul.msk.bf16.vlgmr.msrb.gmra.mxu2 %vm1128_vm7, %v1080_v37  ;;  %v1210_v40 = vrot.slane %v1080_v37, 1 }
 0x271   : > { %v1077_v38 = vpop.f32.mrf.mxu1 }
 0x272   : > { %v1197_v39 = vpack.c.bf16 %v1077_v38, %v1077_v38 }
 0x274   : > { %v1211_v42 = vrot.slane %v1197_v39, 1 }
 0x276   : > { %v1212_v43 = vsel %vm945_vm4, %v1210_v40, %v1211_v42 }
 0x277   : > { %1591 = vmatmul.msk.bf16.vlgmr.msrb.gmra.mxu3 %vm1128_vm7, %v1212_v43 }
 0x2ef   : > { %v1192_v44 = vpop.f32.mrf.mxu2 }
 0x2f0   : > { %v1193_v48 = vadd.f32 %v1192_v44, %v1145_v45 }
 0x2f7   : > { %v1194_v54 = vpop.f32.mrf.mxu2 }
 0x2f8   : > { %v1195_v57 = vadd.f32 %v1194_v54, %v1147_v56 }
 0x2fa   : > { %v1255_v50 = vpop.f32.mrf.mxu3 }
 0x2fb   : > { %v1260_v51 = vadd.f32 %v1255_v50, %v1193_v48 }
 0x2fd   : > { %v1266_v53 = vmul.f32 %v1645_v49, %v1260_v51 }
 0x2ff   : > { %v1272_v55 = vadd.f32 %v1646_v52, %v1266_v53 }
 0x301   : > { %v1274_v58 = vmax.f32 %v1272_v55, 0.0 }
 0x302   : > { %v1257_v59 = vpop.f32.mrf.mxu3 }
 0x303   : > { %1276 = vst [vmem:[%s430_s16] sm:$0xff] %v1274_v58  ;;  %v1261_v60 = vadd.f32 %v1257_v59, %v1195_v57 }
 0x305   : > { %v1267_v61 = vmul.f32 %v1645_v49, %v1261_v60 }
 0x307   : > { %v1273_v62 = vadd.f32 %v1646_v52, %v1267_v61 }
 0x309   : > { %v1275_v63 = vmax.f32 %v1273_v62, 0.0 }
 0x30b   : > { %1277 = vst [vmem:[%s430_s16 + $0x8] sm:$0xff] %v1275_v63 }
 0x30c PF: > { %s22_s21 = sadd.s32 1, %s1653_s21  }
 0x30d   : > { %p19_p4 = scmp.ge.s32.totalorder %s22_s21, 4  }
 0x30f   :  { %21 = sbr.rel (!%p19_p4) target bundleno = 1 (0x1), region = 105 }

</bundles_post_ra>
